<compile_context>
chip_gen: v6e
topology: v6e:2x2x1
jax: 0.10.0
libtpu: 0.0.40
codegen_flags: <defaults>
</compile_context>

<pallas_src>
import math

import jax
import jax.numpy as jnp
from jax.experimental import pallas as pl
from jax.experimental.pallas import tpu as pltpu

_LANE = 128
_SUBLANE = 8
# Per-buffer block cap; 4 buffers in flight (2x in + 2x out) stays far below
# the default scoped VMEM limit on every generation (v5e 16 MiB ... v7x 32 MiB).
_MAX_BLOCK_BYTES = 4 * 1024 * 1024


def _copy_kernel(x_ref, o_ref):
    # One lane-dense (block_rows, lanes) tile per grid step; identity copy.
    o_ref[...] = x_ref[...]


def _pick_layout(total, itemsize):
    """Pick a lane-dense 2-D view (rows, lanes) of `total` elements + row-block size."""
    # Largest multiple-of-128 lane width (<= 1024) that divides the element count.
    lanes = 0
    c = _LANE
    while c <= 1024 and c <= total:
        if total % c == 0:
            lanes = c
        c += _LANE
    if lanes == 0:
        # No multiple-of-128 factorization: single full-array block (always a
        # legal BlockSpec since the block equals the full array dims).
        return 1, total, 1

    rows = total // lanes
    # Largest row-block that is a multiple of 8, divides `rows`, and keeps the
    # per-buffer block under the byte cap (amortizes the ~0.35us/step overhead).
    max_rows = max(_SUBLANE, _MAX_BLOCK_BYTES // (lanes * itemsize))
    block_rows = rows
    d = (min(rows, max_rows) // _SUBLANE) * _SUBLANE
    while d >= _SUBLANE:
        if rows % d == 0:
            block_rows = d
            break
        d -= _SUBLANE
    # Prefer >=2 grid steps so the "parallel" grid axis can shard across v7x's
    # two TensorCores (harmless on single-TC v5e/v6e).
    if block_rows == rows and rows % (2 * _SUBLANE) == 0:
        block_rows = rows // 2
    return rows, lanes, block_rows


def pallas_squeeze(x, axis):
    """torch.squeeze(x, axis) semantics: remove dim `axis` iff it has size 1."""
    ndim = x.ndim
    if axis < 0:
        axis += ndim
    if x.shape[axis] != 1:
        # torch.squeeze(x, dim) is a no-op when that dim is not size 1.
        return x

    out_shape = tuple(d for i, d in enumerate(x.shape) if i != axis)
    total = math.prod(x.shape)
    if total == 0:
        # TODO(synk): degenerate empty tensor — pure metadata change, no kernel launched.
        return jnp.reshape(x, out_shape)

    itemsize = jnp.dtype(x.dtype).itemsize
    rows, lanes, block_rows = _pick_layout(total, itemsize)

    # Wrapper-side reshapes are metadata-only (contiguous layout): the squeeze
    # axis removal is free; only the lane-dense 2-D copy below touches HBM.
    x2 = jnp.reshape(x, (rows, lanes))

    out2 = pl.pallas_call(
        _copy_kernel,
        out_shape=jax.ShapeDtypeStruct((rows, lanes), x.dtype),
        grid=(rows // block_rows,),
        in_specs=[pl.BlockSpec((block_rows, lanes), lambda i: (i, 0))],
        out_specs=pl.BlockSpec((block_rows, lanes), lambda i: (i, 0)),
        compiler_params=pltpu.CompilerParams(
            dimension_semantics=("parallel",),
        ),
    )(x2)

    return jnp.reshape(out2, out_shape)


if __name__ == "__main__":
    key = jax.random.PRNGKey(0)
    # N, C, 1, H, W with the squeeze axis at position 2
    x = jax.random.normal(key, (2, 4, 1, 16, 16), dtype=jnp.float32)
    axis = 2

    out = pallas_squeeze(x, axis)
    out = jax.block_until_ready(out)

    ref = jnp.squeeze(x, axis=axis)
    assert out.shape == ref.shape == (2, 4, 16, 16), out.shape
    assert out.dtype == ref.dtype
    assert jnp.array_equal(out, ref), "mismatch vs jnp.squeeze reference"

    print("KERNEL_OK")
</pallas_src>

<mosaic_0001>
module attributes {stable_mosaic.version = 11 : i64} {
  func.func @_copy_kernel(%arg0: i32, %arg1: memref<2x1024xf32, #tpu.memory_space<vmem>>, %arg2: memref<2x1024xf32, #tpu.memory_space<vmem>>) attributes {dimension_semantics = [#tpu.dimension_semantics<parallel>], iteration_bounds = array<i64: 1>, scalar_prefetch = 0 : i64, scratch_operands = 0 : i64, tpu.core_type = #tpu.core_type<tc>, window_params = [{transform_indices = @transform_0, window_bounds = array<i64: 2, 1024>}, {transform_indices = @transform_1, window_bounds = array<i64: 2, 1024>}]} {
    %c0 = arith.constant 0 : index
    %c0_0 = arith.constant 0 : index
    %0 = vector.load %arg1[%c0, %c0_0] : memref<2x1024xf32, #tpu.memory_space<vmem>>, vector<2x1024xf32>
    %c0_1 = arith.constant 0 : index
    %c0_2 = arith.constant 0 : index
    %1 = vector.load %arg2[%c0_1, %c0_2] : memref<2x1024xf32, #tpu.memory_space<vmem>>, vector<2x1024xf32>
    tpu.vector_store %arg2[%c0_1, %c0_2], %0 {strides = array<i32>} : memref<2x1024xf32, #tpu.memory_space<vmem>>, vector<2x1024xf32>,
    return
  }
  func.func @transform_0(%arg0: i32) -> (i32, i32) {
    %c0_i32 = arith.constant 0 : i32
    %c0_i32_0 = arith.constant 0 : i32
    return %arg0, %c0_i32 : i32, i32
  }
  func.func @transform_1(%arg0: i32) -> (i32, i32) {
    %c0_i32 = arith.constant 0 : i32
    %c0_i32_0 = arith.constant 0 : i32
    return %arg0, %c0_i32 : i32, i32
  }
}

</mosaic_0001>

<bundles_post_ra>
// kernel: tpu_custom_call.1
= control target key start
LH: loop header
LB: loop body
LE: loop exit
PB: predicated region body
PF: predicated region fallthrough
CT: control target
= control target key end

     0   :  { %6 = vsyncpa [#allocation3], 0  ;;  %s104_s0 = inlined_call_operand.hbm [shape: f32[2,1024], index: 0, kind: input, shape index: {}]   ;;  %s105_s1 = inlined_call_operand.hbm [shape: f32[2,1024], index: 1, kind: output, shape index: {}]  }
   0x1   :  { %7 = vsyncpa [#allocation4], 0  ;;  %s86_s6 = smov [#allocation2]  }
   0x2   :  { %s14_s7 = sshll.u32 %s86_s6, 4  ;;  %s15_s7 = int_to_ptr.vmem [resolvable:$true] %s14_s7 }
   0x3   :  { %s50_s8 = scalar_lea.vmem %s15_s7, 256  ;;  %p55_p1 = scmp.lt.s32.totalorder %s15_s7, %s15_s7 }
   0x4   :  { %p51_p0 = scmp.ne.s32.totalorder %s15_s7, %s50_s8  ;;  %p56_p2 = scmp.lt.s32.totalorder %s50_s8, %s50_s8 }
   0x6   :  { %p57_p3 = por %p56_p2, %p55_p1 }
   0x8   :  { %p58_p4 = pnand %p57_p3, %p51_p0 }
   0xa   :  { %61 = shalt.err (!%p58_p4)
}
   0xb   :  { %17 = dma.hbm_to_vmem [thread:$0]  %s104_s0, 256, %s15_s7, [#allocation3]  }
   0xc   :  { %82 = dma.done.wait [#allocation3], 256  }
   0xd   :  { %83 = vsyncadd [#allocation3], 4294967040  ;;  %s87_s11 = smov [#allocation5]   ;;  %v21_v0 = vld [vmem:[#allocation2] sm:$0xff]  ;;  %v22_v1 = vld [vmem:[#allocation2 + $0x8] sm:$0xff] }
   0xe   :  { %s31_s12 = sshll.u32 %s87_s11, 4  ;;  %23 = vst [vmem:[#allocation5] sm:$0xff] %v21_v0  ;;  %24 = vst [vmem:[#allocation5 + $0x8] sm:$0xff] %v22_v1  ;;  %s32_s12 = int_to_ptr.vmem [resolvable:$true] %s31_s12 }
   0xf   :  { %s62_s13 = scalar_lea.vmem %s32_s12, 256  ;;  %p67_p6 = scmp.lt.s32.totalorder %s32_s12, %s32_s12 }
  0x10   :  { %p63_p5 = scmp.ne.s32.totalorder %s32_s12, %s62_s13  ;;  %p68_p7 = scmp.lt.s32.totalorder %s62_s13, %s62_s13 }
  0x12   :  { %p69_p8 = por %p68_p7, %p67_p6 }
  0x14   :  { %p70_p9 = pnand %p69_p8, %p63_p5 }
  0x16   :  { %73 = shalt.err (!%p70_p9)
}
  0x17   :  { %34 = dma.vmem_to_hbm [thread:$0]  %s32_s12, 256, %s105_s1, [#allocation4]  }
  0x18   :  { %84 = dma.done.wait [#allocation4], 256  }
  0x19   :  { %85 = vsyncadd [#allocation4], 4294967040 }
  0x1a   :  { %38 = vsyncpa [#allocation3], 1 }
  0x1b   :  { %39 = vsyncpa [#allocation4], 1 }

</bundles_post_ra>
